<compile_context>
chip_gen: v6e
topology: v6e:2x2x1
jax: 0.10.0
libtpu: 0.0.40
codegen_flags: <defaults>
</compile_context>

<pallas_src>
import jax
import jax.numpy as jnp
from jax.experimental import pallas as pl
from jax.experimental.pallas import tpu as pltpu

KERNEL = 9
STRIDE = 3
BN_EPS = 1e-5
F32 = jnp.float32


def _conv_out(length):
    return (length - KERNEL) // STRIDE + 1


def market_kernel(xflat_ref, x1f_ref, wallet_ref, mask_ref,
                  gsel_ref, ssel_ref,
                  gamma_ref, beta_ref, sbn_ref,
                  w1bd_ref, b1f_ref,
                  w2s_ref, b2_ref,
                  wfc1_ref, bfc1_ref,
                  wfc2_ref, bfc2_ref,
                  ww_ref, wb_ref,
                  d1wm_ref, d1ww_ref, d1b_ref,
                  d2w_ref, d2b_ref,
                  out_ref):
    f32 = jnp.float32

    # ---- BatchNorm1d, training mode: per-channel batch stats over (N, L) ----
    x = xflat_ref[...]                                          # (N*L, C)
    inv_cnt = 1.0 / x.shape[0]
    mean = jnp.sum(x, axis=0, keepdims=True) * inv_cnt          # (1, C)
    xc = x - mean
    var = jnp.sum(xc * xc, axis=0, keepdims=True) * inv_cnt     # biased, two-pass
    a_row = gamma_ref[...] * jax.lax.rsqrt(var + BN_EPS)        # (1, C)
    b_row = beta_ref[...] - mean * a_row                        # (1, C)
    # Expand the per-channel affine to the im2col column layout with one tiny
    # selector matmul each (instead of per-tap, per-sample broadcasts).
    scale_cols = jnp.dot(a_row, sbn_ref[...], preferred_element_type=f32)
    shift_cols = jnp.dot(b_row, sbn_ref[...], preferred_element_type=f32)

    # ---- conv1: stride-folded im2col x block-diagonal weight (one matmul) ----
    x1 = x1f_ref[...] * scale_cols + shift_cols                 # (L1f*N, 3*K*C)
    h1 = jnp.dot(x1, w1bd_ref[...], preferred_element_type=f32) + b1f_ref[...]
    h1 = jnp.maximum(h1, 0.0)                                   # (L1f*N, 3*16)

    # ---- conv2: gather 3 overlapping fold windows via 0/1 selection matmuls ----
    col2 = jnp.concatenate(
        [jnp.dot(gsel_ref[u], h1, preferred_element_type=f32)
         for u in range(gsel_ref.shape[0])], axis=-1)           # (L2*N, 144)
    h2 = jnp.dot(col2, w2s_ref[...], preferred_element_type=f32) + b2_ref[...]
    h2 = jnp.maximum(h2, 0.0)                                   # (L2*N, 32)

    # ---- torch channel-major flatten + fc1 (one batched matmul) ----
    colf = jnp.concatenate(
        [jnp.dot(ssel_ref[j], h2, preferred_element_type=f32)
         for j in range(ssel_ref.shape[0])], axis=-1)           # (N, L2*32)
    m1 = jnp.dot(colf, wfc1_ref[...], preferred_element_type=f32) + bfc1_ref[...]
    m1 = jnp.maximum(m1, 0.0)                                   # (N, 256)

    # ---- fc2 / wallet_net / decision_net ----
    m2 = jnp.dot(m1, wfc2_ref[...], preferred_element_type=f32) + bfc2_ref[...]
    wl = jnp.dot(wallet_ref[...], ww_ref[...], preferred_element_type=f32) + wb_ref[...]
    wl = jnp.maximum(wl, 0.0)                                   # (N, 8)
    d1 = (jnp.dot(m2, d1wm_ref[...], preferred_element_type=f32)
          + jnp.dot(wl, d1ww_ref[...], preferred_element_type=f32)
          + d1b_ref[...])
    d1 = jnp.maximum(d1, 0.0)                                   # (N, 32)
    logits = jnp.dot(d1, d2w_ref[...], preferred_element_type=f32) + d2b_ref[...]
    out_ref[...] = mask_ref[...] * logits


def prepare_params(p, indicator_count, history_length):
    """One-time preprocessing of model weights into kernel-ready layouts."""
    C = indicator_count
    L1 = _conv_out(history_length)
    L2 = _conv_out(L1)
    KC = KERNEL * C

    # conv1 weight as (K*C, 16), then block-diagonal over the 3 fold positions.
    w1col = jnp.transpose(p['conv1_w'], (2, 1, 0)).reshape(KC, 16).astype(F32)
    w1bd = jnp.zeros((STRIDE * KC, STRIDE * 16), F32)
    for v in range(STRIDE):
        w1bd = w1bd.at[v * KC:(v + 1) * KC, v * 16:(v + 1) * 16].set(w1col)

    # Selector that maps the per-channel BN affine onto the im2col columns.
    sbn = (jnp.arange(STRIDE * KC)[None, :] % C
           == jnp.arange(C)[:, None]).astype(F32)               # (C, 3*K*C)

    return {
        'gamma': p['bn_gamma'].reshape(1, C).astype(F32),
        'beta': p['bn_beta'].reshape(1, C).astype(F32),
        'sbn': sbn,
        'w1bd': w1bd,
        'b1f': jnp.tile(p['conv1_b'].astype(F32), STRIDE).reshape(1, STRIDE * 16),
        'w2s': jnp.transpose(p['conv2_w'], (2, 1, 0)).reshape(KERNEL * 16, 32).astype(F32),
        'b2': p['conv2_b'].reshape(1, 32).astype(F32),
        # torch flatten is channel-major (ch*L2 + pos); kernel columns are (pos*32 + ch).
        'wfc1': jnp.transpose(p['fc1_w'].reshape(256, 32, L2), (2, 1, 0)).reshape(L2 * 32, 256).astype(F32),
        'bfc1': p['fc1_b'].reshape(1, 256).astype(F32),
        'wfc2': p['fc2_w'].T.astype(F32),                       # (256, 64)
        'bfc2': p['fc2_b'].reshape(1, 64).astype(F32),
        'ww': p['wallet_w'].T.astype(F32),                      # (W, 8)
        'wb': p['wallet_b'].reshape(1, 8).astype(F32),
        'd1wm': p['dec1_w'].T[:64].astype(F32),                 # (64, 32)
        'd1ww': p['dec1_w'].T[64:].astype(F32),                 # (8, 32)
        'd1b': p['dec1_b'].reshape(1, 32).astype(F32),
        'd2w': p['dec2_w'].T.astype(F32),                       # (32, 3)
        'd2b': p['dec2_b'].reshape(1, 3).astype(F32),
    }


@jax.jit
def market_past_indicators_forward(state, wallet, action_mask, kparams):
    """state: (N, C, L) NCL; wallet: (N, W); action_mask: (N, 3)."""
    N, C, L = state.shape
    L1 = _conv_out(L)
    L2 = _conv_out(L1)

    state_t = jnp.transpose(state, (0, 2, 1)).astype(F32)       # (N, L, C)
    xflat = state_t.reshape(N * L, C)                           # BN statistics input

    # conv1 im2col of the RAW state (BN is applied to columns in the kernel),
    # stride-folded so rows are (fold_pos*N + sample) and columns carry the
    # 3 conv outputs of each fold: col = v*K*C + t*C + c.
    patches = jnp.stack(
        [state_t[:, STRIDE * j:STRIDE * j + KERNEL, :].reshape(N, KERNEL * C)
         for j in range(L1)], axis=1)                           # (N, L1, K*C)
    L1p = ((L1 + STRIDE - 1) // STRIDE) * STRIDE
    if L1p != L1:                                               # pad fold; padded rows never read
        patches = jnp.pad(patches, ((0, 0), (0, L1p - L1), (0, 0)))
    L1f = L1p // STRIDE
    x1f = (patches.reshape(N, L1f, STRIDE, KERNEL * C)
                  .transpose(1, 0, 2, 3)
                  .reshape(L1f * N, STRIDE * KERNEL * C))       # (L1f*N, 3*K*C)

    # 0/1 gather matrices (constant-folded under jit): conv2 output row
    # (j*N + n) reads h1 fold row ((j+u)*N + n); fc1 column block j reads
    # h2 row (j*N + n).
    r2 = jnp.arange(L2 * N)
    j2, n2 = r2 // N, r2 % N
    gsel = jnp.stack(
        [(jnp.arange(L1f * N)[None, :] == ((j2 + u) * N + n2)[:, None]).astype(F32)
         for u in range(STRIDE)], axis=0)                       # (3, L2*N, L1f*N)
    ssel = jnp.stack(
        [(jnp.arange(L2 * N)[None, :] == (j * N + jnp.arange(N))[:, None]).astype(F32)
         for j in range(L2)], axis=0)                           # (L2, N, L2*N)

    kp = kparams
    inputs = (xflat, x1f, wallet.astype(F32), action_mask.astype(F32),
              gsel, ssel,
              kp['gamma'], kp['beta'], kp['sbn'],
              kp['w1bd'], kp['b1f'],
              kp['w2s'], kp['b2'],
              kp['wfc1'], kp['bfc1'],
              kp['wfc2'], kp['bfc2'],
              kp['ww'], kp['wb'],
              kp['d1wm'], kp['d1ww'], kp['d1b'],
              kp['d2w'], kp['d2b'])

    return pl.pallas_call(
        market_kernel,
        out_shape=jax.ShapeDtypeStruct((N, 3), F32),
        in_specs=[pl.BlockSpec(memory_space=pltpu.MemorySpace.VMEM)
                  for _ in range(len(inputs))],
        out_specs=pl.BlockSpec(memory_space=pltpu.MemorySpace.VMEM),
    )(*inputs)


def init_params(key, indicator_count, history_length, wallet_input_length):
    """Deterministic synthetic init mimicking PyTorch default (uniform +-1/sqrt(fan_in))."""
    C = indicator_count
    L1 = _conv_out(history_length)
    L2 = _conv_out(L1)
    F = 32 * L2

    def u(k, shape, fan_in):
        b = 1.0 / float(fan_in) ** 0.5
        return jax.random.uniform(k, shape, jnp.float32, -b, b)

    ks = jax.random.split(key, 14)
    return {
        'bn_gamma': jnp.ones((C,), jnp.float32),
        'bn_beta': jnp.zeros((C,), jnp.float32),
        'conv1_w': u(ks[0], (16, C, KERNEL), C * KERNEL),
        'conv1_b': u(ks[1], (16,), C * KERNEL),
        'conv2_w': u(ks[2], (32, 16, KERNEL), 16 * KERNEL),
        'conv2_b': u(ks[3], (32,), 16 * KERNEL),
        'fc1_w': u(ks[4], (256, F), F),
        'fc1_b': u(ks[5], (256,), F),
        'fc2_w': u(ks[6], (64, 256), 256),
        'fc2_b': u(ks[7], (64,), 256),
        'wallet_w': u(ks[8], (8, wallet_input_length), wallet_input_length),
        'wallet_b': u(ks[9], (8,), wallet_input_length),
        'dec1_w': u(ks[10], (32, 72), 72),
        'dec1_b': u(ks[11], (32,), 72),
        'dec2_w': u(ks[12], (3, 32), 32),
        'dec2_b': u(ks[13], (3,), 32),
    }


def reference_forward(state, wallet, action_mask, params):
    """Pure-JAX mirror of the PyTorch forward (f32), used to check the kernel."""
    C = state.shape[1]
    x = state.astype(jnp.float32)
    mean = jnp.mean(x, axis=(0, 2), keepdims=True)
    var = jnp.mean((x - mean) ** 2, axis=(0, 2), keepdims=True)
    xn = (x - mean) / jnp.sqrt(var + BN_EPS)
    xn = xn * params['bn_gamma'].reshape(1, C, 1) + params['bn_beta'].reshape(1, C, 1)

    def conv1d(inp, w, b):
        _, _, Li = inp.shape
        Cout, _, K = w.shape
        Lo = (Li - K) // STRIDE + 1
        cols = jnp.stack([inp[:, :, j * STRIDE:j * STRIDE + K] for j in range(Lo)],
                         axis=2)                                # (N, Cin, Lo, K)
        return jnp.einsum('ncjk,ock->noj', cols, w) + b.reshape(1, Cout, 1)

    h1 = jax.nn.relu(conv1d(xn, params['conv1_w'], params['conv1_b']))
    h2 = jax.nn.relu(conv1d(h1, params['conv2_w'], params['conv2_b']))
    flat = h2.reshape(h2.shape[0], -1)                          # channel-major like torch
    m = jax.nn.relu(flat @ params['fc1_w'].T + params['fc1_b'])
    m = m @ params['fc2_w'].T + params['fc2_b']
    wl = jax.nn.relu(wallet @ params['wallet_w'].T + params['wallet_b'])
    cat = jnp.concatenate([m, wl], axis=1)
    d = jax.nn.relu(cat @ params['dec1_w'].T + params['dec1_b'])
    logits = d @ params['dec2_w'].T + params['dec2_b']
    return action_mask * logits


if __name__ == "__main__":
    INDICATORS = 4      # indicator_count
    HISTORY = 60        # history_length -> conv1=18, conv2=4, flatten=128
    WALLET_LEN = 6      # wallet_input_length
    BATCH = 2

    key = jax.random.PRNGKey(0)
    kp_key, ks, kw, km = jax.random.split(key, 4)
    params = init_params(kp_key, INDICATORS, HISTORY, WALLET_LEN)
    kparams = prepare_params(params, INDICATORS, HISTORY)

    state = jax.random.normal(ks, (BATCH, INDICATORS, HISTORY), jnp.float32)
    wallet = jax.random.normal(kw, (BATCH, WALLET_LEN), jnp.float32)
    action_mask = (jax.random.uniform(km, (BATCH, 3)) > 0.2).astype(jnp.float32)

    out = market_past_indicators_forward(state, wallet, action_mask, kparams)
    out = jax.block_until_ready(out)

    ref = reference_forward(state, wallet, action_mask, params)
    assert out.shape == (BATCH, 3)
    assert jnp.allclose(out, ref, rtol=2e-3, atol=2e-3), (out, ref, jnp.max(jnp.abs(out - ref)))
    print("KERNEL_OK")
</pallas_src>

<mosaic_0001>
module attributes {stable_mosaic.version = 11 : i64} {
  func.func @market_kernel(%arg0: memref<120x4xf32, #tpu.memory_space<vmem>>, %arg1: memref<12x108xf32, #tpu.memory_space<vmem>>, %arg2: memref<2x6xf32, #tpu.memory_space<vmem>>, %arg3: memref<2x3xf32, #tpu.memory_space<vmem>>, %arg4: memref<3x8x12xf32, #tpu.memory_space<vmem>>, %arg5: memref<4x2x8xf32, #tpu.memory_space<vmem>>, %arg6: memref<1x4xf32, #tpu.memory_space<vmem>>, %arg7: memref<1x4xf32, #tpu.memory_space<vmem>>, %arg8: memref<4x108xf32, #tpu.memory_space<vmem>>, %arg9: memref<108x48xf32, #tpu.memory_space<vmem>>, %arg10: memref<1x48xf32, #tpu.memory_space<vmem>>, %arg11: memref<144x32xf32, #tpu.memory_space<vmem>>, %arg12: memref<1x32xf32, #tpu.memory_space<vmem>>, %arg13: memref<128x256xf32, #tpu.memory_space<vmem>>, %arg14: memref<1x256xf32, #tpu.memory_space<vmem>>, %arg15: memref<256x64xf32, #tpu.memory_space<vmem>>, %arg16: memref<1x64xf32, #tpu.memory_space<vmem>>, %arg17: memref<6x8xf32, #tpu.memory_space<vmem>>, %arg18: memref<1x8xf32, #tpu.memory_space<vmem>>, %arg19: memref<64x32xf32, #tpu.memory_space<vmem>>, %arg20: memref<8x32xf32, #tpu.memory_space<vmem>>, %arg21: memref<1x32xf32, #tpu.memory_space<vmem>>, %arg22: memref<32x3xf32, #tpu.memory_space<vmem>>, %arg23: memref<1x3xf32, #tpu.memory_space<vmem>>, %arg24: memref<2x3xf32, #tpu.memory_space<vmem>>) attributes {dimension_semantics = [], scalar_prefetch = 0 : i64, scratch_operands = 0 : i64, tpu.core_type = #tpu.core_type<tc>} {
    %c0 = arith.constant 0 : index
    %c0_0 = arith.constant 0 : index
    %0 = vector.load %arg0[%c0, %c0_0] : memref<120x4xf32, #tpu.memory_space<vmem>>, vector<120x4xf32>
    %cst = arith.constant dense<0.000000e+00> : vector<4xf32>
    %1 = vector.multi_reduction <add>, %0, %cst [0] : vector<120x4xf32> to vector<4xf32>
    %2 = vector.shape_cast %1 : vector<4xf32> to vector<1x4xf32>
    %cst_1 = arith.constant 0.00833333377 : f32
    %3 = vector.broadcast %cst_1 : f32 to vector<1x4xf32>
    %4 = arith.mulf %2, %3 : vector<1x4xf32>
    %5 = vector.broadcast %4 : vector<1x4xf32> to vector<120x4xf32>
    %6 = arith.subf %0, %5 : vector<120x4xf32>
    %7 = arith.mulf %6, %6 : vector<120x4xf32>
    %cst_2 = arith.constant dense<0.000000e+00> : vector<4xf32>
    %8 = vector.multi_reduction <add>, %7, %cst_2 [0] : vector<120x4xf32> to vector<4xf32>
    %9 = vector.shape_cast %8 : vector<4xf32> to vector<1x4xf32>
    %cst_3 = arith.constant 0.00833333377 : f32
    %10 = vector.broadcast %cst_3 : f32 to vector<1x4xf32>
    %11 = arith.mulf %9, %10 : vector<1x4xf32>
    %c0_4 = arith.constant 0 : index
    %c0_5 = arith.constant 0 : index
    %12 = vector.load %arg6[%c0_4, %c0_5] : memref<1x4xf32, #tpu.memory_space<vmem>>, vector<1x4xf32>
    %cst_6 = arith.constant 9.99999974E-6 : f32
    %13 = vector.broadcast %cst_6 : f32 to vector<1x4xf32>
    %14 = arith.addf %11, %13 : vector<1x4xf32>
    %15 = math.rsqrt %14 : vector<1x4xf32>
    %16 = arith.mulf %12, %15 : vector<1x4xf32>
    %c0_7 = arith.constant 0 : index
    %c0_8 = arith.constant 0 : index
    %17 = vector.load %arg7[%c0_7, %c0_8] : memref<1x4xf32, #tpu.memory_space<vmem>>, vector<1x4xf32>
    %18 = arith.mulf %4, %16 : vector<1x4xf32>
    %19 = arith.subf %17, %18 : vector<1x4xf32>
    %c0_9 = arith.constant 0 : index
    %c0_10 = arith.constant 0 : index
    %20 = vector.load %arg8[%c0_9, %c0_10] : memref<4x108xf32, #tpu.memory_space<vmem>>, vector<4x108xf32>
    %cst_11 = arith.constant dense<0.000000e+00> : vector<1x108xf32>
    %21 = tpu.matmul %16, %20, %cst_11 {dimension_numbers = #tpu.dot_dimension_numbers<[1], [0], [0], [1], [0, 0, 1, 1], [], []>} : vector<1x4xf32>, vector<4x108xf32>, vector<1x108xf32> -> vector<1x108xf32>
    %c0_12 = arith.constant 0 : index
    %c0_13 = arith.constant 0 : index
    %22 = vector.load %arg8[%c0_12, %c0_13] : memref<4x108xf32, #tpu.memory_space<vmem>>, vector<4x108xf32>
    %cst_14 = arith.constant dense<0.000000e+00> : vector<1x108xf32>
    %23 = tpu.matmul %19, %22, %cst_14 {dimension_numbers = #tpu.dot_dimension_numbers<[1], [0], [0], [1], [0, 0, 1, 1], [], []>} : vector<1x4xf32>, vector<4x108xf32>, vector<1x108xf32> -> vector<1x108xf32>
    %c0_15 = arith.constant 0 : index
    %c0_16 = arith.constant 0 : index
    %24 = vector.load %arg1[%c0_15, %c0_16] : memref<12x108xf32, #tpu.memory_space<vmem>>, vector<12x108xf32>
    %25 = vector.broadcast %21 : vector<1x108xf32> to vector<12x108xf32>
    %26 = arith.mulf %24, %25 : vector<12x108xf32>
    %27 = vector.broadcast %23 : vector<1x108xf32> to vector<12x108xf32>
    %28 = arith.addf %26, %27 : vector<12x108xf32>
    %c0_17 = arith.constant 0 : index
    %c0_18 = arith.constant 0 : index
    %29 = vector.load %arg9[%c0_17, %c0_18] : memref<108x48xf32, #tpu.memory_space<vmem>>, vector<108x48xf32>
    %cst_19 = arith.constant dense<0.000000e+00> : vector<12x48xf32>
    %30 = tpu.matmul %28, %29, %cst_19 {dimension_numbers = #tpu.dot_dimension_numbers<[1], [0], [0], [1], [0, 0, 1, 1], [], []>} : vector<12x108xf32>, vector<108x48xf32>, vector<12x48xf32> -> vector<12x48xf32>
    %c0_20 = arith.constant 0 : index
    %c0_21 = arith.constant 0 : index
    %31 = vector.load %arg10[%c0_20, %c0_21] : memref<1x48xf32, #tpu.memory_space<vmem>>, vector<1x48xf32>
    %32 = vector.broadcast %31 : vector<1x48xf32> to vector<12x48xf32>
    %33 = arith.addf %30, %32 : vector<12x48xf32>
    %cst_22 = arith.constant 0.000000e+00 : f32
    %34 = vector.broadcast %cst_22 : f32 to vector<12x48xf32>
    %35 = arith.maximumf %33, %34 : vector<12x48xf32>
    %c0_23 = arith.constant 0 : index
    %c0_24 = arith.constant 0 : index
    %c0_25 = arith.constant 0 : index
    %36 = vector.load %arg4[%c0_23, %c0_24, %c0_25] : memref<3x8x12xf32, #tpu.memory_space<vmem>>, vector<1x8x12xf32>
    %37 = vector.shape_cast %36 : vector<1x8x12xf32> to vector<8x12xf32>
    %cst_26 = arith.constant dense<0.000000e+00> : vector<8x48xf32>
    %38 = tpu.matmul %37, %35, %cst_26 {dimension_numbers = #tpu.dot_dimension_numbers<[1], [0], [0], [1], [0, 0, 1, 1], [], []>} : vector<8x12xf32>, vector<12x48xf32>, vector<8x48xf32> -> vector<8x48xf32>
    %c1 = arith.constant 1 : index
    %c0_27 = arith.constant 0 : index
    %c0_28 = arith.constant 0 : index
    %39 = vector.load %arg4[%c1, %c0_27, %c0_28] : memref<3x8x12xf32, #tpu.memory_space<vmem>>, vector<1x8x12xf32>
    %40 = vector.shape_cast %39 : vector<1x8x12xf32> to vector<8x12xf32>
    %cst_29 = arith.constant dense<0.000000e+00> : vector<8x48xf32>
    %41 = tpu.matmul %40, %35, %cst_29 {dimension_numbers = #tpu.dot_dimension_numbers<[1], [0], [0], [1], [0, 0, 1, 1], [], []>} : vector<8x12xf32>, vector<12x48xf32>, vector<8x48xf32> -> vector<8x48xf32>
    %c2 = arith.constant 2 : index
    %c0_30 = arith.constant 0 : index
    %c0_31 = arith.constant 0 : index
    %42 = vector.load %arg4[%c2, %c0_30, %c0_31] : memref<3x8x12xf32, #tpu.memory_space<vmem>>, vector<1x8x12xf32>
    %43 = vector.shape_cast %42 : vector<1x8x12xf32> to vector<8x12xf32>
    %cst_32 = arith.constant dense<0.000000e+00> : vector<8x48xf32>
    %44 = tpu.matmul %43, %35, %cst_32 {dimension_numbers = #tpu.dot_dimension_numbers<[1], [0], [0], [1], [0, 0, 1, 1], [], []>} : vector<8x12xf32>, vector<12x48xf32>, vector<8x48xf32> -> vector<8x48xf32>
    %45 = tpu.concatenate %38, %41, %44 in 1 : vector<8x48xf32>, vector<8x48xf32>, vector<8x48xf32> -> vector<8x144xf32>
    %c0_33 = arith.constant 0 : index
    %c0_34 = arith.constant 0 : index
    %46 = vector.load %arg11[%c0_33, %c0_34] : memref<144x32xf32, #tpu.memory_space<vmem>>, vector<144x32xf32>
    %cst_35 = arith.constant dense<0.000000e+00> : vector<8x32xf32>
    %47 = tpu.matmul %45, %46, %cst_35 {dimension_numbers = #tpu.dot_dimension_numbers<[1], [0], [0], [1], [0, 0, 1, 1], [], []>} : vector<8x144xf32>, vector<144x32xf32>, vector<8x32xf32> -> vector<8x32xf32>
    %c0_36 = arith.constant 0 : index
    %c0_37 = arith.constant 0 : index
    %48 = vector.load %arg12[%c0_36, %c0_37] : memref<1x32xf32, #tpu.memory_space<vmem>>, vector<1x32xf32>
    %49 = vector.broadcast %48 : vector<1x32xf32> to vector<8x32xf32>
    %50 = arith.addf %47, %49 : vector<8x32xf32>
    %cst_38 = arith.constant 0.000000e+00 : f32
    %51 = vector.broadcast %cst_38 : f32 to vector<8x32xf32>
    %52 = arith.maximumf %50, %51 : vector<8x32xf32>
    %c0_39 = arith.constant 0 : index
    %c0_40 = arith.constant 0 : index
    %c0_41 = arith.constant 0 : index
    %53 = vector.load %arg5[%c0_39, %c0_40, %c0_41] : memref<4x2x8xf32, #tpu.memory_space<vmem>>, vector<1x2x8xf32>
    %54 = vector.shape_cast %53 : vector<1x2x8xf32> to vector<2x8xf32>
    %cst_42 = arith.constant dense<0.000000e+00> : vector<2x32xf32>
    %55 = tpu.matmul %54, %52, %cst_42 {dimension_numbers = #tpu.dot_dimension_numbers<[1], [0], [0], [1], [0, 0, 1, 1], [], []>} : vector<2x8xf32>, vector<8x32xf32>, vector<2x32xf32> -> vector<2x32xf32>
    %c1_43 = arith.constant 1 : index
    %c0_44 = arith.constant 0 : index
    %c0_45 = arith.constant 0 : index
    %56 = vector.load %arg5[%c1_43, %c0_44, %c0_45] : memref<4x2x8xf32, #tpu.memory_space<vmem>>, vector<1x2x8xf32>
    %57 = vector.shape_cast %56 : vector<1x2x8xf32> to vector<2x8xf32>
    %cst_46 = arith.constant dense<0.000000e+00> : vector<2x32xf32>
    %58 = tpu.matmul %57, %52, %cst_46 {dimension_numbers = #tpu.dot_dimension_numbers<[1], [0], [0], [1], [0, 0, 1, 1], [], []>} : vector<2x8xf32>, vector<8x32xf32>, vector<2x32xf32> -> vector<2x32xf32>
    %c2_47 = arith.constant 2 : index
    %c0_48 = arith.constant 0 : index
    %c0_49 = arith.constant 0 : index
    %59 = vector.load %arg5[%c2_47, %c0_48, %c0_49] : memref<4x2x8xf32, #tpu.memory_space<vmem>>, vector<1x2x8xf32>
    %60 = vector.shape_cast %59 : vector<1x2x8xf32> to vector<2x8xf32>
    %cst_50 = arith.constant dense<0.000000e+00> : vector<2x32xf32>
    %61 = tpu.matmul %60, %52, %cst_50 {dimension_numbers = #tpu.dot_dimension_numbers<[1], [0], [0], [1], [0, 0, 1, 1], [], []>} : vector<2x8xf32>, vector<8x32xf32>, vector<2x32xf32> -> vector<2x32xf32>
    %c3 = arith.constant 3 : index
    %c0_51 = arith.constant 0 : index
    %c0_52 = arith.constant 0 : index
    %62 = vector.load %arg5[%c3, %c0_51, %c0_52] : memref<4x2x8xf32, #tpu.memory_space<vmem>>, vector<1x2x8xf32>
    %63 = vector.shape_cast %62 : vector<1x2x8xf32> to vector<2x8xf32>
    %cst_53 = arith.constant dense<0.000000e+00> : vector<2x32xf32>
    %64 = tpu.matmul %63, %52, %cst_53 {dimension_numbers = #tpu.dot_dimension_numbers<[1], [0], [0], [1], [0, 0, 1, 1], [], []>} : vector<2x8xf32>, vector<8x32xf32>, vector<2x32xf32> -> vector<2x32xf32>
    %65 = tpu.concatenate %55, %58, %61, %64 in 1 : vector<2x32xf32>, vector<2x32xf32>, vector<2x32xf32>, vector<2x32xf32> -> vector<2x128xf32>
    %c0_54 = arith.constant 0 : index
    %c0_55 = arith.constant 0 : index
    %66 = vector.load %arg13[%c0_54, %c0_55] : memref<128x256xf32, #tpu.memory_space<vmem>>, vector<128x256xf32>
    %cst_56 = arith.constant dense<0.000000e+00> : vector<2x256xf32>
    %67 = tpu.matmul %65, %66, %cst_56 {dimension_numbers = #tpu.dot_dimension_numbers<[1], [0], [0], [1], [0, 0, 1, 1], [], []>} : vector<2x128xf32>, vector<128x256xf32>, vector<2x256xf32> -> vector<2x256xf32>
    %c0_57 = arith.constant 0 : index
    %c0_58 = arith.constant 0 : index
    %68 = vector.load %arg14[%c0_57, %c0_58] : memref<1x256xf32, #tpu.memory_space<vmem>>, vector<1x256xf32>
    %69 = vector.broadcast %68 : vector<1x256xf32> to vector<2x256xf32>
    %70 = arith.addf %67, %69 : vector<2x256xf32>
    %cst_59 = arith.constant 0.000000e+00 : f32
    %71 = vector.broadcast %cst_59 : f32 to vector<2x256xf32>
    %72 = arith.maximumf %70, %71 : vector<2x256xf32>
    %c0_60 = arith.constant 0 : index
    %c0_61 = arith.constant 0 : index
    %73 = vector.load %arg15[%c0_60, %c0_61] : memref<256x64xf32, #tpu.memory_space<vmem>>, vector<256x64xf32>
    %cst_62 = arith.constant dense<0.000000e+00> : vector<2x64xf32>
    %74 = tpu.matmul %72, %73, %cst_62 {dimension_numbers = #tpu.dot_dimension_numbers<[1], [0], [0], [1], [0, 0, 1, 1], [], []>} : vector<2x256xf32>, vector<256x64xf32>, vector<2x64xf32> -> vector<2x64xf32>
    %c0_63 = arith.constant 0 : index
    %c0_64 = arith.constant 0 : index
    %75 = vector.load %arg16[%c0_63, %c0_64] : memref<1x64xf32, #tpu.memory_space<vmem>>, vector<1x64xf32>
    %76 = vector.broadcast %75 : vector<1x64xf32> to vector<2x64xf32>
    %77 = arith.addf %74, %76 : vector<2x64xf32>
    %c0_65 = arith.constant 0 : index
    %c0_66 = arith.constant 0 : index
    %78 = vector.load %arg2[%c0_65, %c0_66] : memref<2x6xf32, #tpu.memory_space<vmem>>, vector<2x6xf32>
    %c0_67 = arith.constant 0 : index
    %c0_68 = arith.constant 0 : index
    %79 = vector.load %arg17[%c0_67, %c0_68] : memref<6x8xf32, #tpu.memory_space<vmem>>, vector<6x8xf32>
    %cst_69 = arith.constant dense<0.000000e+00> : vector<2x8xf32>
    %80 = tpu.matmul %78, %79, %cst_69 {dimension_numbers = #tpu.dot_dimension_numbers<[1], [0], [0], [1], [0, 0, 1, 1], [], []>} : vector<2x6xf32>, vector<6x8xf32>, vector<2x8xf32> -> vector<2x8xf32>
    %c0_70 = arith.constant 0 : index
    %c0_71 = arith.constant 0 : index
    %81 = vector.load %arg18[%c0_70, %c0_71] : memref<1x8xf32, #tpu.memory_space<vmem>>, vector<1x8xf32>
    %82 = vector.broadcast %81 : vector<1x8xf32> to vector<2x8xf32>
    %83 = arith.addf %80, %82 : vector<2x8xf32>
    %cst_72 = arith.constant 0.000000e+00 : f32
    %84 = vector.broadcast %cst_72 : f32 to vector<2x8xf32>
    %85 = arith.maximumf %83, %84 : vector<2x8xf32>
    %c0_73 = arith.constant 0 : index
    %c0_74 = arith.constant 0 : index
    %86 = vector.load %arg19[%c0_73, %c0_74] : memref<64x32xf32, #tpu.memory_space<vmem>>, vector<64x32xf32>
    %cst_75 = arith.constant dense<0.000000e+00> : vector<2x32xf32>
    %87 = tpu.matmul %77, %86, %cst_75 {dimension_numbers = #tpu.dot_dimension_numbers<[1], [0], [0], [1], [0, 0, 1, 1], [], []>} : vector<2x64xf32>, vector<64x32xf32>, vector<2x32xf32> -> vector<2x32xf32>
    %c0_76 = arith.constant 0 : index
    %c0_77 = arith.constant 0 : index
    %88 = vector.load %arg20[%c0_76, %c0_77] : memref<8x32xf32, #tpu.memory_space<vmem>>, vector<8x32xf32>
    %cst_78 = arith.constant dense<0.000000e+00> : vector<2x32xf32>
    %89 = tpu.matmul %85, %88, %cst_78 {dimension_numbers = #tpu.dot_dimension_numbers<[1], [0], [0], [1], [0, 0, 1, 1], [], []>} : vector<2x8xf32>, vector<8x32xf32>, vector<2x32xf32> -> vector<2x32xf32>
    %90 = arith.addf %87, %89 : vector<2x32xf32>
    %c0_79 = arith.constant 0 : index
    %c0_80 = arith.constant 0 : index
    %91 = vector.load %arg21[%c0_79, %c0_80] : memref<1x32xf32, #tpu.memory_space<vmem>>, vector<1x32xf32>
    %92 = vector.broadcast %91 : vector<1x32xf32> to vector<2x32xf32>
    %93 = arith.addf %90, %92 : vector<2x32xf32>
    %cst_81 = arith.constant 0.000000e+00 : f32
    %94 = vector.broadcast %cst_81 : f32 to vector<2x32xf32>
    %95 = arith.maximumf %93, %94 : vector<2x32xf32>
    %c0_82 = arith.constant 0 : index
    %c0_83 = arith.constant 0 : index
    %96 = vector.load %arg22[%c0_82, %c0_83] : memref<32x3xf32, #tpu.memory_space<vmem>>, vector<32x3xf32>
    %cst_84 = arith.constant dense<0.000000e+00> : vector<2x3xf32>
    %97 = tpu.matmul %95, %96, %cst_84 {dimension_numbers = #tpu.dot_dimension_numbers<[1], [0], [0], [1], [0, 0, 1, 1], [], []>} : vector<2x32xf32>, vector<32x3xf32>, vector<2x3xf32> -> vector<2x3xf32>
    %c0_85 = arith.constant 0 : index
    %c0_86 = arith.constant 0 : index
    %98 = vector.load %arg23[%c0_85, %c0_86] : memref<1x3xf32, #tpu.memory_space<vmem>>, vector<1x3xf32>
    %99 = vector.broadcast %98 : vector<1x3xf32> to vector<2x3xf32>
    %100 = arith.addf %97, %99 : vector<2x3xf32>
    %c0_87 = arith.constant 0 : index
    %c0_88 = arith.constant 0 : index
    %101 = vector.load %arg3[%c0_87, %c0_88] : memref<2x3xf32, #tpu.memory_space<vmem>>, vector<2x3xf32>
    %102 = arith.mulf %101, %100 : vector<2x3xf32>
    %c0_89 = arith.constant 0 : index
    %c0_90 = arith.constant 0 : index
    %103 = vector.load %arg24[%c0_89, %c0_90] : memref<2x3xf32, #tpu.memory_space<vmem>>, vector<2x3xf32>
    tpu.vector_store %arg24[%c0_89, %c0_90], %102 {strides = array<i32>} : memref<2x3xf32, #tpu.memory_space<vmem>>, vector<2x3xf32>,
    return
  }
}

</mosaic_0001>

<bundles_post_ra>
// kernel: market_past_indicators_forward.1
= control target key start
LH: loop header
LB: loop body
LE: loop exit
PB: predicated region body
PF: predicated region fallthrough
CT: control target
= control target key end

     0   :  { %s2726_s0 = inlined_call_operand.vmem [shape: f32[120,4], index: 0, kind: input, shape index: {}]   ;;  %s2727_s1 = inlined_call_operand.vmem [shape: f32[12,108], index: 1, kind: input, shape index: {}]   ;;  %s2728_s2 = inlined_call_operand.vmem [shape: f32[2,6], index: 2, kind: input, shape index: {}]   ;;  %s2729_s3 = inlined_call_operand.vmem [shape: f32[2,3], index: 3, kind: input, shape index: {}]   ;;  %s2730_s4 = inlined_call_operand.vmem [shape: f32[3,8,12], index: 4, kind: input, shape index: {}]   ;;  %s2731_s5 = inlined_call_operand.vmem [shape: f32[4,2,8], index: 5, kind: input, shape index: {}]   ;;  %s2732_s6 = inlined_call_operand.vmem [shape: f32[1,4], index: 6, kind: input, shape index: {}]   ;;  %s2733_s7 = inlined_call_operand.vmem [shape: f32[1,4], index: 7, kind: input, shape index: {}]   ;;  %s2734_s8 = inlined_call_operand.vmem [shape: f32[4,108], index: 8, kind: input, shape index: {}]   ;;  %s2735_s9 = inlined_call_operand.vmem [shape: f32[108,48], index: 9, kind: input, shape index: {}]   ;;  %s2736_s10 = inlined_call_operand.vmem [shape: f32[1,48], index: 10, kind: input, shape index: {}]   ;;  %s2737_s11 = inlined_call_operand.vmem [shape: f32[144,32], index: 11, kind: input, shape index: {}]   ;;  %s2738_s12 = inlined_call_operand.vmem [shape: f32[1,32], index: 12, kind: input, shape index: {}]   ;;  %s2739_s13 = inlined_call_operand.vmem [shape: f32[128,256], index: 13, kind: input, shape index: {}]   ;;  %s2740_s14 = inlined_call_operand.vmem [shape: f32[1,256], index: 14, kind: input, shape index: {}]   ;;  %s2741_s15 = inlined_call_operand.vmem [shape: f32[256,64], index: 15, kind: input, shape index: {}]   ;;  %s2742_s16 = inlined_call_operand.vmem [shape: f32[1,64], index: 16, kind: input, shape index: {}]   ;;  %s2743_s17 = inlined_call_operand.vmem [shape: f32[6,8], index: 17, kind: input, shape index: {}]   ;;  %s2744_s18 = inlined_call_operand.vmem [shape: f32[1,8], index: 18, kind: input, shape index: {}]   ;;  %s2745_s19 = inlined_call_operand.vmem [shape: f32[64,32], index: 19, kind: input, shape index: {}]   ;;  %s2746_s20 = inlined_call_operand.vmem [shape: f32[8,32], index: 20, kind: input, shape index: {}]   ;;  %s2747_s21 = inlined_call_operand.vmem [shape: f32[1,32], index: 21, kind: input, shape index: {}]   ;;  %s2748_s22 = inlined_call_operand.vmem [shape: f32[32,3], index: 22, kind: input, shape index: {}]   ;;  %s2749_s23 = inlined_call_operand.vmem [shape: f32[1,3], index: 23, kind: input, shape index: {}]   ;;  %s2750_s24 = inlined_call_operand.hbm [shape: f32[2,3], index: 24, kind: output, shape index: {}]  }
   0x1   :  { %2755 = sst [smem:[#allocation5_spill]] %s2726_s0 }
   0x2   :  { %2756 = sst [smem:[#allocation6_spill]] %s2727_s1 }
   0x3   :  { %2757 = sst [smem:[#allocation7_spill]] %s2728_s2 }
   0x4   :  { %2758 = sst [smem:[#allocation8_spill]] %s2729_s3 }
   0x5   :  { %2759 = sst [smem:[#allocation9_spill]] %s2730_s4 }
   0x6   :  { %2760 = sst [smem:[#allocation10_spill]] %s2731_s5 }
   0x7   :  { %2761 = sst [smem:[#allocation11_spill]] %s2732_s6 }
   0x8   :  { %2762 = sst [smem:[#allocation12_spill]] %s2733_s7 }
   0x9   :  { %2763 = sst [smem:[#allocation13_spill]] %s2734_s8 }
   0xa   :  { %s2764_s27 = sld [smem:[#allocation13_spill]]  ;;  %vm207_vm0 = vcmask 1043456   ;;  %v1989_v2 = vmov 0.0   ;;  %vm1990_vm1 = vmmov 0   ;;  %vm93_vm2 = vcmask 31744  }
   0xb   :  { %s2765_s2 = sld [smem:[#allocation5_spill]]  ;;  %1836 = vmatprep.subr.mxu0 %v1989_v2  ;;  %1838 = vmatprep.mubr.msk.f32.mxu0 %vm1990_vm1, %v1989_v2  ;;  %v2165_v17 = vld [vmem:[%s2735_s9 + $0x68] sm:$0xf] }
   0xc   :  { %1841 = vmatprep.subr.mxu1 %v1989_v2  ;;  %1843 = vmatprep.mubr.msk.f32.mxu1 %vm1990_vm1, %v1989_v2 }
  0x10   :  { %v203_v0 = vld [vmem:[%s2764_s27] sm:$0xf] }
  0x11   :  { %v2127_v1 = vld [vmem:[%s2765_s2] sm:$0xff]  ;;  %v79_v3 = vld [vmem:[%s2765_s2 + $0x8] sm:$0xff]  ;;  %v80_v4 = vld [vmem:[%s2765_s2 + $0x10] sm:$0xff]  ;;  %1837 = vmatpush3.msk.msra.mxu0 %vm207_vm0, %v203_v0  ;;  %1842 = vmatpush3.msk.msra.mxu1 %vm207_vm0, %v203_v0 }
  0x12   :  { %v81_v5 = vld [vmem:[%s2765_s2 + $0x18] sm:$0xff]  ;;  %v94_v6 = vsel %vm93_vm2, %v2127_v1, 0.0  ;;  %v95_v7 = vsel %vm93_vm2, %v79_v3, 0.0  ;;  %v97_v8 = vsel %vm93_vm2, %v80_v4, 0.0  ;;  %v82_v9 = vld [vmem:[%s2765_s2 + $0x20] sm:$0xff]  ;;  %1877 = vmatprep.subr.mxu1 %v1989_v2  ;;  %v83_v12 = vld [vmem:[%s2765_s2 + $0x28] sm:$0xff]  ;;  %1846 = vmatprep.subr.msk.mxu0 %vm207_vm0, %v2165_v17 }
  0x13   :  { %v96_v10 = vadd.f32 %v95_v7, %v94_v6  ;;  %v99_v11 = vsel %vm93_vm2, %v81_v5, 0.0  ;;  %v101_v14 = vsel %vm93_vm2, %v82_v9, 0.0  ;;  %v84_v15 = vld [vmem:[%s2765_s2 + $0x30] sm:$0xff]  ;;  %v103_v18 = vsel %vm93_vm2, %v83_v12, 0.0  ;;  %v85_v19 = vld [vmem:[%s2765_s2 + $0x38] sm:$0xff] }
  0x15   :  { %v98_v13 = vadd.f32 %v97_v8, %v96_v10 }
  0x17   :  { %v100_v16 = vadd.f32 %v99_v11, %v98_v13 }
  0x19   :  { %v102_v20 = vadd.f32 %v101_v14, %v100_v16 }
  0x1a   :  { %29 = vsyncpa [#allocation3], 0  ;;  %v105_v21 = vsel %vm93_vm2, %v84_v15, 0.0  ;;  %v86_v22 = vld [vmem:[%s2765_s2 + $0x40] sm:$0xff]  ;;  %v107_v24 = vsel %vm93_vm2, %v85_v19, 0.0  ;;  %v87_v25 = vld [vmem:[%s2765_s2 + $0x48] sm:$0xff] }
  0x1b   :  { %v104_v23 = vadd.f32 %v103_v18, %v102_v20  ;;  %v109_v27 = vsel %vm93_vm2, %v86_v22, 0.0  ;;  %v88_v28 = vld [vmem:[%s2765_s2 + $0x50] sm:$0xff]  ;;  %v111_v30 = vsel %vm93_vm2, %v87_v25, 0.0  ;;  %v89_v31 = vld [vmem:[%s2765_s2 + $0x58] sm:$0xff]  ;;  %v90_v34 = vld [vmem:[%s2765_s2 + $0x60] sm:$0xff]  ;;  %s2766_s30 = sld [smem:[#allocation11_spill]] }
  0x1c   :  { %v113_v33 = vsel %vm93_vm2, %v88_v28, 0.0  ;;  %v115_v36 = vsel %vm93_vm2, %v89_v31, 0.0  ;;  %v91_v37 = vld [vmem:[%s2765_s2 + $0x68] sm:$0xff]  ;;  %v117_v39 = vsel %vm93_vm2, %v90_v34, 0.0  ;;  %v92_v40 = vld [vmem:[%s2765_s2 + $0x70] sm:$0xff]  ;;  %s2767_s8 = sld [smem:[#allocation12_spill]] }
  0x1d   :  { %v106_v26 = vadd.f32 %v105_v21, %v104_v23  ;;  %v119_v42 = vsel %vm93_vm2, %v91_v37, 0.0  ;;  %v121_v44 = vsel %vm93_vm2, %v92_v40, 0.0  ;;  %s2768_s25 = sld [smem:[#allocation6_spill]]  ;;  %vm389_vm3 = vcmask 883712   ;;  %s1991_s7 = smov 48  }
  0x1e   :  { %s2769_s27 = sld [smem:[#allocation9_spill]]  ;;  %vm477_vm4 = vcmask 97280   ;;  %vm712_vm5 = vcmask 392192   ;;  %vm714_vm6 = vcmask 785408   ;;  %vm741_vm7 = vcmask 130048   ;;  %s1993_s29 = smov 32  }
  0x1f   :  { %v108_v29 = vadd.f32 %v107_v24, %v106_v26  ;;  %s2770_s4 = sld [smem:[#allocation10_spill]]  ;;  %vm816_vm8 = vcmask 64512   ;;  %vm1127_vm9 = vcmask 261120   ;;  %vm1129_vm10 = vcmask 523264  }
  0x20   :  { %vm1371_vm11 = vcmask 1045504   ;;  %s2771_s6 = sld [smem:[#allocation7_spill]]  ;;  %vm1367_vm12 = vcmask 48128   ;;  %vm1696_vm13 = vcmask 17408  }
  0x21   :  { %v110_v32 = vadd.f32 %v109_v27, %v108_v29 }
  0x23   :  { %v112_v35 = vadd.f32 %v111_v30, %v110_v32 }
  0x25   :  { %v114_v38 = vadd.f32 %v113_v33, %v112_v35 }
  0x27   :  { %v116_v41 = vadd.f32 %v115_v36, %v114_v38 }
  0x29   :  { %v118_v43 = vadd.f32 %v117_v39, %v116_v41 }
  0x2b   :  { %v120_v45 = vadd.f32 %v119_v42, %v118_v43 }
  0x2d   :  { %v122_v46 = vadd.f32 %v121_v44, %v120_v45 }
  0x2f   :  { %v123_v47 = vrot.slane %v122_v46, 4 }
  0x31   :  { %v124_v48 = vadd.f32 %v123_v47, %v122_v46 }
  0x33   :  { %v125_v49 = vrot.slane %v124_v48, 2 }
  0x35   :  { %v126_v50 = vadd.f32 %v125_v49, %v124_v48 }
  0x37   :  { %v127_v51 = vrot.slane %v126_v50, 1 }
  0x39   :  { %v128_v52 = vadd.f32 %v127_v51, %v126_v50 }
  0x3b   :  { %v2203_v53 = vmul.f32 0.008333334, %v128_v52 }
  0x3d   :  { %v130_v54 = vsub.f32 %v2127_v1, %v2203_v53  ;;  %v131_v55 = vsub.f32 %v79_v3, %v2203_v53  ;;  %v132_v56 = vsub.f32 %v80_v4, %v2203_v53  ;;  %v133_v57 = vsub.f32 %v81_v5, %v2203_v53 }
  0x3e   :  { %v134_v58 = vsub.f32 %v82_v9, %v2203_v53  ;;  %v135_v62 = vsub.f32 %v83_v12, %v2203_v53  ;;  %v136_v0 = vsub.f32 %v84_v15, %v2203_v53  ;;  %v137_v5 = vsub.f32 %v85_v19, %v2203_v53 }
  0x3f   :  { %v145_v59 = vmul.f32 %v130_v54, %v130_v54  ;;  %v146_v60 = vmul.f32 %v131_v55, %v131_v55  ;;  %v147_v61 = vmul.f32 %v132_v56, %v132_v56  ;;  %v148_v63 = vmul.f32 %v133_v57, %v133_v57 }
  0x40   :  { %v149_v6 = vmul.f32 %v134_v58, %v134_v58  ;;  %v150_v8 = vmul.f32 %v135_v62, %v135_v62  ;;  %v138_v11 = vsub.f32 %v86_v22, %v2203_v53  ;;  %v151_v12 = vmul.f32 %v136_v0, %v136_v0  ;;  %v380_v0 = vld [vmem:[%s2735_s9 + $0x60] sm:$0xff] }
  0x41   :  { %v160_v7 = vsel %vm93_vm2, %v145_v59, 0.0  ;;  %v161_v1 = vsel %vm93_vm2, %v146_v60, 0.0  ;;  %v163_v4 = vsel %vm93_vm2, %v147_v61, 0.0  ;;  %v165_v9 = vsel %vm93_vm2, %v148_v63, 0.0  ;;  %v196_v60 = vld [vmem:[%s2766_s30] sm:$0x1] }
  0x42   :  { %v162_v3 = vadd.f32 %v161_v1, %v160_v7  ;;  %v167_v13 = vsel %vm93_vm2, %v149_v6, 0.0  ;;  %v139_v15 = vsub.f32 %v87_v25, %v2203_v53  ;;  %v152_v16 = vmul.f32 %v137_v5, %v137_v5  ;;  %v200_v63 = vld [vmem:[%s2767_s8] sm:$0x1]  ;;  %v379_v7 = vld [vmem:[%s2735_s9 + $0x58] sm:$0xff]  ;;  %v374_v5 = vld [vmem:[%s2735_s9 + $0x30] sm:$0xff]  ;;  %s1992_s30 = smov 96  }
  0x43   :  { %v169_v18 = vsel %vm93_vm2, %v150_v8, 0.0  ;;  %v140_v21 = vsub.f32 %v88_v28, %v2203_v53  ;;  %v153_v23 = vmul.f32 %v138_v11, %v138_v11  ;;  %v171_v19 = vsel %vm93_vm2, %v151_v12, 0.0  ;;  %v373_v8 = vld [vmem:[%s2735_s9 + $0x28] sm:$0xff]  ;;  %v370_v11 = vld [vmem:[%s2735_s9 + $0x10] sm:$0xff]  ;;  %s1995_s8 = smov [#allocation2]  }
  0x44   :  { %v164_v10 = vadd.f32 %v163_v4, %v162_v3  ;;  %v141_v26 = vsub.f32 %v89_v31, %v2203_v53  ;;  %v154_v27 = vmul.f32 %v139_v15, %v139_v15  ;;  %v173_v22 = vsel %vm93_vm2, %v152_v16, 0.0  ;;  %v378_v3 = vld [vmem:[%s2735_s9 + $0x50] sm:$0xff]  ;;  %v375_v4 = vld [vmem:[%s2735_s9 + $0x38] sm:$0xff]  ;;  %v369_v12 = vld [vmem:[%s2735_s9 + $0x8] sm:$0xff] }
  0x45   :  { %v142_v30 = vsub.f32 %v90_v34, %v2203_v53  ;;  %v155_v32 = vmul.f32 %v140_v21, %v140_v21  ;;  %v175_v25 = vsel %vm93_vm2, %v153_v23, 0.0  ;;  %v143_v35 = vsub.f32 %v91_v37, %v2203_v53  ;;  %v355_v21 = vld [vmem:[%s2768_s25 + $0x8] sm:$0xf] }
  0x46   :  { %v166_v14 = vadd.f32 %v165_v9, %v164_v10  ;;  %v156_v36 = vmul.f32 %v141_v26, %v141_v26  ;;  %v177_v28 = vsel %vm93_vm2, %v154_v27, 0.0  ;;  %v144_v39 = vsub.f32 %v92_v40, %v2203_v53  ;;  %v372_v9 = vld [vmem:[%s2735_s9 + $0x20] sm:$0xff]  ;;  %v371_v10 = vld [vmem:[%s2735_s9 + $0x18] sm:$0xff] }
  0x47   :  { %v157_v41 = vmul.f32 %v142_v30, %v142_v30  ;;  %v179_v31 = vsel %vm93_vm2, %v155_v32, 0.0  ;;  %v158_v43 = vmul.f32 %v143_v35, %v143_v35 }
  0x48   :  { %v168_v20 = vadd.f32 %v167_v13, %v166_v14  ;;  %v181_v44 = vsel %vm93_vm2, %v156_v36, 0.0  ;;  %v159_v45 = vmul.f32 %v144_v39, %v144_v39  ;;  %v368_v13 = vld [vmem:[%s2735_s9] sm:$0xff]  ;;  %v356_v14 = vlaneseq }
  0x49   :  { %v183_v46 = vsel %vm93_vm2, %v157_v41, 0.0  ;;  %v185_v37 = vsel %vm93_vm2, %v158_v43, 0.0  ;;  %v476_v41 = vld [vmem:[%s2769_s27] sm:$0xff]  ;;  %v731_v43 = vld [vmem:[%s2737_s11 + $0x78] sm:$0xff] }
  0x4a   :  { %v170_v24 = vadd.f32 %v169_v18, %v168_v20  ;;  %v187_v49 = vsel %vm93_vm2, %v159_v45, 0.0  ;;  %v2289_v15 = vshrl.u32 %v356_v14, 7  ;;  %v354_v20 = vld [vmem:[%s2768_s25] sm:$0xff]  ;;  %v1162_v14 = vld [vmem:[%s2739_s13 + $0xf0] sm:$0xff] }
  0x4b   :  { %v728_v45 = vld [vmem:[%s2737_s11 + $0x60] sm:$0xff] }
  0x4c   :  { %v172_v29 = vadd.f32 %v171_v19, %v170_v24  ;;  %v2292_v16 = vsub.s32 0, %v2289_v15 }
  0x4e   :  { %v174_v33 = vadd.f32 %v173_v22, %v172_v29 }
  0x50   :  { %v176_v38 = vadd.f32 %v175_v25, %v174_v33  ;;  %v1716_v25 = vld [vmem:[%s2736_s10] ss:$0 sm:$0xff] }
  0x52   :  { %v178_v42 = vadd.f32 %v177_v28, %v176_v38 }
  0x54   :  { %v180_v34 = vadd.f32 %v179_v31, %v178_v42  ;;  %v1722_v31 = vld [vmem:[%s2769_s27 + $0x8] sm:$0xff]  ;;  %v1725_v42 = vld [vmem:[%s2769_s27 + $0x10] sm:$0xff] }
  0x56   :  { %v182_v47 = vadd.f32 %v181_v44, %v180_v34  ;;  %v730_v44 = vld [vmem:[%s2737_s11 + $0x70] sm:$0xff]  ;;  %v729_v34 = vld [vmem:[%s2737_s11 + $0x68] sm:$0xff] }
  0x58   :  { %v184_v48 = vadd.f32 %v183_v46, %v182_v47  ;;  %v727_v46 = vld [vmem:[%s2737_s11 + $0x58] sm:$0xff]  ;;  %v726_v47 = vld [vmem:[%s2737_s11 + $0x50] sm:$0xff] }
  0x5a   :  { %v186_v50 = vadd.f32 %v185_v37, %v184_v48  ;;  %v725_v37 = vld [vmem:[%s2737_s11 + $0x48] sm:$0xff]  ;;  %v724_v48 = vld [vmem:[%s2737_s11 + $0x40] sm:$0xff] }
  0x5c   :  { %v188_v51 = vadd.f32 %v187_v49, %v186_v50  ;;  %v723_v49 = vld [vmem:[%s2737_s11 + $0x38] sm:$0xff]  ;;  %v722_v50 = vld [vmem:[%s2737_s11 + $0x30] sm:$0xff] }
  0x5e   :  { %v189_v40 = vrot.slane %v188_v51, 4 }
  0x60   :  { %v190_v52 = vadd.f32 %v189_v40, %v188_v51  ;;  %v721_v51 = vld [vmem:[%s2737_s11 + $0x28] sm:$0xff]  ;;  %v720_v40 = vld [vmem:[%s2737_s11 + $0x20] sm:$0xff] }
  0x62   :  { %v191_v54 = vrot.slane %v190_v52, 2 }
  0x64   :  { %v192_v55 = vadd.f32 %v191_v54, %v190_v52  ;;  %v719_v52 = vld [vmem:[%s2737_s11 + $0x18] sm:$0xff]  ;;  %v718_v54 = vld [vmem:[%s2737_s11 + $0x10] sm:$0xff] }
  0x66   :  { %v193_v56 = vrot.slane %v192_v55, 1 }
  0x68   :  { %v194_v57 = vadd.f32 %v193_v56, %v192_v55  ;;  %v717_v55 = vld [vmem:[%s2737_s11 + $0x8] sm:$0xff]  ;;  %v716_v56 = vld [vmem:[%s2737_s11] sm:$0xff] }
  0x6a   :  { %v195_v58 = vmul.f32 0.008333334, %v194_v57  ;;  %v733_v57 = vld [vmem:[%s2737_s11 + $0x88] sm:$0xff] }
  0x6c   :  { %v197_v59 = vadd.f32 1e-05, %v195_v58  ;;  %v732_v58 = vld [vmem:[%s2737_s11 + $0x80] sm:$0xff] }
  0x6e   :  { %1965 = vrsqrt.f32 %v197_v59 }
  0x7b   :  { %v1966_v61 = vpop.eup %1965 }
  0x7c   :  { %v199_v62 = vmul.f32 %v1966_v61, %v196_v60 }
  0x7e   :  { %1839 = vmatmul.mubr.msk.f32.vlgmr.msra.gmra.mxu0 %vm93_vm2, %v199_v62  ;;  %v201_v6 = vmul.f32 %v199_v62, %v2203_v53  ;;  %v377_v53 = vld [vmem:[%s2735_s9 + $0x48] sm:$0xff] }
  0x7f   :  { %1847 = vmatpush3.msk.msra.mxu0 %vm207_vm0, %v2165_v17  ;;  %v376_v17 = vld [vmem:[%s2735_s9 + $0x40] sm:$0xff]  ;;  %s1994_s9 = smov 64  }
  0x80   :  { %v202_v1 = vsub.f32 %v200_v63, %v201_v6  ;;  %1848 = vmatprep.subr.mxu0 %v380_v0 }
  0x81   :  { %1849 = vmatpush3.msra.mxu0 %v380_v0 }
  0x82   :  { %1844 = vmatmul.mubr.msk.f32.vlgmr.msra.gmra.mxu1 %vm93_vm2, %v202_v1  ;;  %1850 = vmatprep.subr.mxu0 %v379_v7 }
  0x83   :  { %1851 = vmatpush3.msra.mxu0 %v379_v7  ;;  %1881 = vmatprep.mubr.msk.f32.mxu1 %vm1990_vm1, %v1989_v2 }
  0x84   :  { %1852 = vmatprep.subr.mxu0 %v378_v3 }
  0x85   :  { %1853 = vmatpush3.msra.mxu0 %v378_v3 }
  0x86   :  { %1854 = vmatprep.subr.mxu0 %v377_v53 }
  0x87   :  { %1855 = vmatpush3.msra.mxu0 %v377_v53  ;;  %v1728_v53 = vld [vmem:[%s2738_s12] ss:$0 sm:$0xff] }
  0x88   :  { %1856 = vmatprep.subr.mxu0 %v376_v17 }
  0x89   :  { %1857 = vmatpush3.msra.mxu0 %v376_v17 }
  0x8a   :  { %1858 = vmatprep.subr.mxu0 %v375_v4 }
  0x8b   :  { %1859 = vmatpush3.msra.mxu0 %v375_v4 }
  0x8c   :  { %1860 = vmatprep.subr.mxu0 %v374_v5 }
  0x8d   :  { %1861 = vmatpush3.msra.mxu0 %v374_v5 }
  0x8e   :  { %1862 = vmatprep.subr.mxu0 %v373_v8 }
  0x8f   :  { %1863 = vmatpush3.msra.mxu0 %v373_v8 }
  0x90   :  { %1864 = vmatprep.subr.mxu0 %v372_v9 }
  0x91   :  { %1865 = vmatpush3.msra.mxu0 %v372_v9  ;;  %v815_v9 = vld [vmem:[%s2770_s4] sm:$0x3] }
  0x92   :  { %1866 = vmatprep.subr.mxu0 %v371_v10 }
  0x93   :  { %1867 = vmatpush3.msra.mxu0 %v371_v10  ;;  %v1731_v10 = vld [vmem:[%s2770_s4 + $0x2] sm:$0x3] }
  0x94   :  { %1868 = vmatprep.subr.mxu0 %v370_v11 }
  0x95   :  { %1869 = vmatpush3.msra.mxu0 %v370_v11  ;;  %v1733_v11 = vld [vmem:[%s2770_s4 + $0x4] sm:$0x3] }
  0x96   :  { %1870 = vmatprep.subr.mxu0 %v369_v12 }
  0x97   :  { %1871 = vmatpush3.msra.mxu0 %v369_v12  ;;  %v1735_v12 = vld [vmem:[%s2770_s4 + $0x6] sm:$0x3]  ;;  %s1704_s4 = sshll.u32 %s1995_s8, 4  ;;  %s1705_s4 = int_to_ptr.vmem [resolvable:$true] %s1704_s4 }
  0x98   :  { %1872 = vmatprep.subr.mxu0 %v368_v13  ;;  %p1972_p1 = scmp.lt.s32.totalorder %s1705_s4, %s1705_s4 }
  0x99   :  { %1873 = vmatpush3.msra.mxu0 %v368_v13  ;;  %v1163_v13 = vld [vmem:[%s2739_s13 + $0xf8] sm:$0xff] }
  0x9a   :  { %1898 = vmatprep.subr.mxu0 %v1989_v2 }
 0x13e   :  { %v277_v18 = vpop.f32.mrf.mxu0 }
 0x13f   :  { %v359_v23 = vrot.slane %v277_v18, %v2292_v16  ;;  %v1161_v18 = vld [vmem:[%s2739_s13 + $0xe8] sm:$0xff] }
 0x140   :  { %v1840_v19 = vpop.f32.mrf.mxu0 }
 0x141   :  { %v360_v24 = vmul.f32 %v359_v23, %v354_v20  ;;  %v361_v26 = vmul.f32 %v359_v23, %v355_v21  ;;  %v1160_v20 = vld [vmem:[%s2739_s13 + $0xe0] sm:$0xff]  ;;  %v1159_v21 = vld [vmem:[%s2739_s13 + $0xd8] sm:$0xff]  ;;  %v1158_v23 = vld [vmem:[%s2739_s13 + $0xd0] sm:$0xff] }
 0x142   :  { %v350_v27 = vpop.f32.mrf.mxu1  ;;  %v1157_v19 = vld [vmem:[%s2739_s13 + $0xc8] sm:$0xff] }
 0x143   :  { %v365_v22 = vrot.slane %v350_v27, %v2292_v16  ;;  %v1154_v27 = vld [vmem:[%s2739_s13 + $0xb0] sm:$0xff] }
 0x144   :  { %v1845_v29 = vpop.f32.mrf.mxu1 }
 0x145   :  { %v366_v30 = vadd.f32 %v365_v22, %v360_v24  ;;  %v367_v32 = vadd.f32 %v365_v22, %v361_v26  ;;  %v1156_v24 = vld [vmem:[%s2739_s13 + $0xc0] sm:$0xff]  ;;  %v1155_v26 = vld [vmem:[%s2739_s13 + $0xb8] sm:$0xff]  ;;  %v1153_v22 = vld [vmem:[%s2739_s13 + $0xa8] sm:$0xff] }
 0x146   :  { %v1152_v29 = vld [vmem:[%s2739_s13 + $0xa0] sm:$0xff] }
 0x147   :  { %1874 = vmatprep.mubr.msk.f32.mxu0 %vm389_vm3, %v366_v30  ;;  %v1151_v30 = vld [vmem:[%s2739_s13 + $0x98] sm:$0xff] }
 0x148   :  { %1875 = vmatmul.mubr.msk.f32.vlgmr.msra.gmra.mxu0 %vm389_vm3, %v367_v32  ;;  %v1150_v32 = vld [vmem:[%s2739_s13 + $0x90] sm:$0xff] }
 0x149   :  { %1900 = vmatprep.mubr.msk.f32.mxu0 %vm1990_vm1, %v1989_v2 }
 0x208   :  { %v1876_v33 = vpop.f32.mrf.mxu0 }
 0x209   :  { %v471_v35 = vadd.f32 %v1876_v33, %v1716_v25  ;;  %v1148_v33 = vld [vmem:[%s2739_s13 + $0x80] sm:$0xff] }
 0x20a   :  { %v465_v36 = vpop.f32.mrf.mxu0 }
 0x20b   :  { %v475_v28 = vmax.f32 %v471_v35, 0.0  ;;  %v466_v38 = vadd.f32 %v1716_v25, %v465_v36  ;;  %v1149_v25 = vld [vmem:[%s2739_s13 + $0x88] sm:$0xff]  ;;  %v1147_v35 = vld [vmem:[%s2739_s13 + $0x78] sm:$0xff]  ;;  %v1146_v36 = vld [vmem:[%s2739_s13 + $0x70] sm:$0xff] }
 0x20d   :  { %v474_v39 = vmax.f32 %v466_v38, 0.0  ;;  %1878 = vmatpush3.msk.msra.mxu1 %vm207_vm0, %v475_v28  ;;  %v1144_v38 = vld [vmem:[%s2739_s13 + $0x60] sm:$0xff] }
 0x20e   :  { %1879 = vmatprep.subr.mxu1 %v1989_v2 }
 0x20f   :  { %1880 = vmatpush3.msra.mxu1 %v474_v39 }
 0x210   :  { %1882 = vmatmul.mubr.msk.f32.vlgmr.msra.gmra.mxu1 %vm477_vm4, %v476_v41  ;;  %1884 = vmatprep.subr.mxu1 %v1989_v2  ;;  %v1142_v41 = vld [vmem:[%s2739_s13 + $0x50] sm:$0xff] }
 0x211   :  { %1885 = vmatpush3.msk.msra.mxu1 %vm207_vm0, %v475_v28  ;;  %1888 = vmatprep.mubr.msk.f32.mxu1 %vm1990_vm1, %v1989_v2 }
 0x212   :  { %1886 = vmatprep.subr.mxu1 %v1989_v2 }
 0x213   :  { %1887 = vmatpush3.msra.mxu1 %v474_v39 }
 0x214   :  { %1889 = vmatmul.mubr.msk.f32.vlgmr.msra.gmra.mxu1 %vm477_vm4, %v1722_v31  ;;  %1891 = vmatprep.subr.mxu1 %v1989_v2  ;;  %v1141_v31 = vld [vmem:[%s2739_s13 + $0x48] sm:$0xff] }
 0x215   :  { %1892 = vmatpush3.msk.msra.mxu1 %vm207_vm0, %v475_v28  ;;  %1895 = vmatprep.mubr.msk.f32.mxu1 %vm1990_vm1, %v1989_v2  ;;  %v1145_v28 = vld [vmem:[%s2739_s13 + $0x68] sm:$0xff] }
 0x216   :  { %1893 = vmatprep.subr.mxu1 %v1989_v2 }
 0x217   :  { %1894 = vmatpush3.msra.mxu1 %v474_v39  ;;  %v1143_v39 = vld [vmem:[%s2739_s13 + $0x58] sm:$0xff] }
 0x218   :  { %1896 = vmatmul.mubr.msk.f32.vlgmr.msra.gmra.mxu1 %vm477_vm4, %v1725_v42  ;;  %744 = vmatprep.subr.mxu1 %v1989_v2  ;;  %v1140_v42 = vld [vmem:[%s2739_s13 + $0x40] sm:$0xff] }
 0x219   :  { %745 = vmatpush1.msra.mxu1 %v731_v43  ;;  %v1139_v43 = vld [vmem:[%s2739_s13 + $0x38] sm:$0xff] }
 0x21a   :  { %746 = vmatprep.subr.mxu1 %v1989_v2 }
 0x21b   :  { %747 = vmatpush1.msra.mxu1 %v730_v44  ;;  %v1138_v44 = vld [vmem:[%s2739_s13 + $0x30] sm:$0xff] }
 0x21c   :  { %748 = vmatprep.subr.mxu1 %v1989_v2 }
 0x21d   :  { %749 = vmatpush1.msra.mxu1 %v729_v34  ;;  %v1137_v34 = vld [vmem:[%s2739_s13 + $0x28] sm:$0xff] }
 0x21e   :  { %750 = vmatprep.subr.mxu1 %v1989_v2 }
 0x21f   :  { %751 = vmatpush1.msra.mxu1 %v728_v45  ;;  %v1136_v45 = vld [vmem:[%s2739_s13 + $0x20] sm:$0xff] }
 0x220   :  { %752 = vmatprep.subr.mxu1 %v1989_v2 }
 0x221   :  { %753 = vmatpush1.msra.mxu1 %v727_v46  ;;  %v1135_v46 = vld [vmem:[%s2739_s13 + $0x18] sm:$0xff] }
 0x222   :  { %754 = vmatprep.subr.mxu1 %v1989_v2 }
 0x223   :  { %755 = vmatpush1.msra.mxu1 %v726_v47  ;;  %v1134_v47 = vld [vmem:[%s2739_s13 + $0x10] sm:$0xff] }
 0x224   :  { %756 = vmatprep.subr.mxu1 %v1989_v2 }
 0x225   :  { %757 = vmatpush1.msra.mxu1 %v725_v37  ;;  %v1133_v37 = vld [vmem:[%s2739_s13 + $0x8] sm:$0xff] }
 0x226   :  { %758 = vmatprep.subr.mxu1 %v1989_v2 }
 0x227   :  { %759 = vmatpush1.msra.mxu1 %v724_v48 }
 0x228   :  { %760 = vmatprep.subr.mxu1 %v1989_v2 }
 0x229   :  { %761 = vmatpush1.msra.mxu1 %v723_v49  ;;  %v1132_v49 = vld [vmem:[%s2739_s13] sm:$0xff] }
 0x22a   :  { %762 = vmatprep.subr.mxu1 %v1989_v2 }
 0x22b   :  { %763 = vmatpush1.msra.mxu1 %v722_v50  ;;  %v1280_v50 = vld [vmem:[%s2741_s15 + $0xf8] sm:$0xff] }
 0x22c   :  { %764 = vmatprep.subr.mxu1 %v1989_v2 }
 0x22d   :  { %765 = vmatpush1.msra.mxu1 %v721_v51  ;;  %v1264_v51 = vld [vmem:[%s2741_s15 + $0x78] sm:$0xff] }
 0x22e   :  { %766 = vmatprep.subr.mxu1 %v1989_v2 }
 0x22f   :  { %767 = vmatpush1.msra.mxu1 %v720_v40  ;;  %v1279_v40 = vld [vmem:[%s2741_s15 + $0xf0] sm:$0xff] }
 0x230   :  { %768 = vmatprep.subr.mxu1 %v1989_v2 }
 0x231   :  { %769 = vmatpush1.msra.mxu1 %v719_v52 }
 0x232   :  { %770 = vmatprep.subr.mxu1 %v1989_v2 }
 0x233   :  { %771 = vmatpush1.msra.mxu1 %v718_v54  ;;  %v1263_v54 = vld [vmem:[%s2741_s15 + $0x70] sm:$0xff] }
 0x234   :  { %772 = vmatprep.subr.mxu1 %v1989_v2 }
 0x235   :  { %773 = vmatpush1.msra.mxu1 %v717_v55  ;;  %v1278_v55 = vld [vmem:[%s2741_s15 + $0xe8] sm:$0xff] }
 0x236   :  { %774 = vmatprep.subr.mxu1 %v1989_v2 }
 0x237   :  { %775 = vmatpush1.msra.mxu1 %v716_v56 }
 0x238   :  { %804 = vmatprep.subr.mxu1 %v1989_v2 }
 0x239   :  { %805 = vmatpush2.msra.mxu1 %v733_v57  ;;  %v1262_v57 = vld [vmem:[%s2741_s15 + $0x68] sm:$0xff] }
 0x23a   :  { %806 = vmatprep.subr.mxu1 %v1989_v2 }
 0x23b   :  { %807 = vmatpush2.msra.mxu1 %v732_v58  ;;  %v1277_v58 = vld [vmem:[%s2741_s15 + $0xe0] sm:$0xff] }
 0x23c   :  { %1783 = vmatprep.subr.mxu1 %v1280_v50 }
 0x2d0   :  { %v550_v59 = vpop.f32.mrf.mxu1 }
 0x2d2   :  { %v1883_v60 = vpop.f32.mrf.mxu1 }
 0x2d3   :  { %v1261_v60 = vld [vmem:[%s2741_s15 + $0x60] sm:$0xff] }
 0x2d4   :  { %v625_v61 = vpop.f32.mrf.mxu1 }
 0x2d5   :  { %705 = vrot.lane.b32.xlu0 %v625_v61, %s1991_s7  ;;  %v1276_v61 = vld [vmem:[%s2741_s15 + $0xd8] sm:$0xff] }
 0x2d6   :  { %v1890_v62 = vpop.f32.mrf.mxu1 }
 0x2d8   :  { %v700_v63 = vpop.f32.mrf.mxu1 }
 0x2d9   :  { %709 = vrot.lane.b32.xlu0 %v700_v63, %s1992_s30  ;;  %v1260_v63 = vld [vmem:[%s2741_s15 + $0x58] sm:$0xff] }
 0x2da   :  { %v1897_v0 = vpop.f32.mrf.mxu1 }
 0x2db   :  { %v1275_v0 = vld [vmem:[%s2741_s15 + $0xd0] sm:$0xff] }
 0x347   :  { %v706_v6 = vpop.permute.xlu0 %705 }
 0x348   :  { %v713_v7 = vsel %vm712_vm5, %v550_v59, %v706_v6 }
 0x34b   :  { %v710_v1 = vpop.permute.xlu0 %709 }
 0x34c   :  { %v715_v3 = vsel %vm714_vm6, %v713_v7, %v710_v1  ;;  %1729 = vmatprep.mubr.msk.f32.mxu1 %vm741_vm7, %v710_v1  ;;  %v1259_v7 = vld [vmem:[%s2741_s15 + $0x50] sm:$0xff]  ;;  %v1274_v1 = vld [vmem:[%s2741_s15 + $0xc8] sm:$0xff] }
 0x34d   :  { %809 = vmatmul.mubr.f32.vlgmr.msra.gmra.mxu1 %v715_v3 }
 0x34e   :  { %1784 = vmatpush3.msra.mxu1 %v1264_v51 }
 0x34f   :  { %1785 = vmatprep.subr.mxu1 %v1279_v40  ;;  %v1448_v40 = vld [vmem:[%s2745_s19 + $0x10] sm:$0xff] }
 0x350   :  { %1786 = vmatpush3.msra.mxu1 %v1263_v54 }
 0x351   :  { %1787 = vmatprep.subr.mxu1 %v1278_v55  ;;  %v1447_v55 = vld [vmem:[%s2745_s19 + $0x8] sm:$0xff] }
 0x352   :  { %1788 = vmatpush3.msra.mxu1 %v1262_v57  ;;  %v1446_v57 = vld [vmem:[%s2745_s19] sm:$0xff] }
 0x353   :  { %1789 = vmatprep.subr.mxu1 %v1277_v58 }
 0x354   :  { %1790 = vmatpush3.msra.mxu1 %v1261_v60 }
 0x355   :  { %1791 = vmatprep.subr.mxu1 %v1276_v61 }
 0x356   :  { %1792 = vmatpush3.msra.mxu1 %v1260_v63 }
 0x357   :  { %1793 = vmatprep.subr.mxu1 %v1275_v0  ;;  %v1613_v0 = vld [vmem:[%s2748_s22 + $0x18] sm:$0xff] }
 0x358   :  { %1794 = vmatpush3.msra.mxu1 %v1259_v7  ;;  %v1612_v7 = vld [vmem:[%s2748_s22 + $0x10] sm:$0xff] }
 0x359   :  { %1795 = vmatprep.subr.mxu1 %v1274_v1  ;;  %v1611_v1 = vld [vmem:[%s2748_s22 + $0x8] sm:$0xff] }
 0x40d   :  { %v810_v17 = vpop.f32.mrf.mxu1 }
 0x40e   :  { %v811_v4 = vadd.f32 %v1728_v53, %v810_v17  ;;  %v1258_v53 = vld [vmem:[%s2741_s15 + $0x48] sm:$0xff]  ;;  %v1273_v17 = vld [vmem:[%s2741_s15 + $0xc0] sm:$0xff] }
 0x40f   :  { %v812_v5 = vpop.f32.mrf.mxu1  ;;  %1796 = vmatpush3.msra.mxu1 %v1258_v53 }
 0x410   :  { %v814_v8 = vmax.f32 %v811_v4, 0.0  ;;  %v1257_v5 = vld [vmem:[%s2741_s15 + $0x40] sm:$0xff]  ;;  %1797 = vmatprep.subr.mxu1 %v1273_v17 }
 0x411   :  { %1798 = vmatpush3.msra.mxu1 %v1257_v5  ;;  %v1743_v17 = vld [vmem:[%s2747_s21] ss:$0 sm:$0xff]  ;;  %s1967_s21 = scalar_lea.vmem %s1705_s4, 32 }
 0x412   :  { %1899 = vmatpush3.msra.mxu0 %v814_v8  ;;  %p1968_p0 = scmp.ne.s32.totalorder %s1705_s4, %s1967_s21  ;;  %p1973_p2 = scmp.lt.s32.totalorder %s1967_s21, %s1967_s21 }
 0x413   :  { %1901 = vmatmul.mubr.msk.f32.vlgmr.msra.gmra.mxu0 %vm816_vm8, %v815_v9  ;;  %1903 = vmatprep.subr.mxu0 %v1989_v2  ;;  %v1256_v9 = vld [vmem:[%s2741_s15 + $0x38] sm:$0xff] }
 0x414   :  { %1904 = vmatpush3.msra.mxu0 %v814_v8  ;;  %1905 = vmatprep.mubr.msk.f32.mxu0 %vm1990_vm1, %v1989_v2  ;;  %p1974_p3 = por %p1973_p2, %p1972_p1 }
 0x415   :  { %1908 = vmatprep.subr.mxu0 %v1989_v2 }
 0x416   :  { %p1975_p4 = pnand %p1974_p3, %p1968_p0 }
 0x417   :  { %1906 = vmatmul.mubr.msk.f32.vlgmr.msra.gmra.mxu0 %vm816_vm8, %v1731_v10  ;;  %v1271_v10 = vld [vmem:[%s2741_s15 + $0xb0] sm:$0xff] }
 0x418   :  { %1909 = vmatpush3.msra.mxu0 %v814_v8  ;;  %1910 = vmatprep.mubr.msk.f32.mxu0 %vm1990_vm1, %v1989_v2 }
 0x419   :  { %1913 = vmatprep.subr.mxu0 %v1989_v2 }
 0x41b   :  { %1911 = vmatmul.mubr.msk.f32.vlgmr.msra.gmra.mxu0 %vm816_vm8, %v1733_v11  ;;  %v1255_v11 = vld [vmem:[%s2741_s15 + $0x30] sm:$0xff] }
 0x41c   :  { %1914 = vmatpush3.msra.mxu0 %v814_v8  ;;  %1915 = vmatprep.mubr.msk.f32.mxu0 %vm1990_vm1, %v1989_v2  ;;  %v1272_v8 = vld [vmem:[%s2741_s15 + $0xb8] sm:$0xff] }
 0x41d   :  { %1176 = vmatprep.subr.mxu0 %v1163_v13  ;;  %1799 = vmatprep.subr.mxu1 %v1272_v8  ;;  %v1254_v13 = vld [vmem:[%s2741_s15 + $0x28] sm:$0xff] }
 0x41e   :  { %1800 = vmatpush3.msra.mxu1 %v1256_v9 }
 0x41f   :  { %1916 = vmatmul.mubr.msk.f32.vlgmr.msra.gmra.mxu0 %vm816_vm8, %v1735_v12  ;;  %v1270_v12 = vld [vmem:[%s2741_s15 + $0xa8] sm:$0xff]  ;;  %1801 = vmatprep.subr.mxu1 %v1271_v10  ;;  %v1744_v10 = vld [vmem:[%s2749_s23] ss:$0 sm:$0xff] }
 0x420   :  { %1240 = vmatprep.mubr.f32.mxu0 %v1989_v2  ;;  %1177 = vmatpush1.msra.mxu0 %v1162_v14  ;;  %v1269_v14 = vld [vmem:[%s2741_s15 + $0xa0] sm:$0xff] }
 0x421   :  { %1178 = vmatprep.subr.mxu0 %v1161_v18  ;;  %1802 = vmatpush3.msra.mxu1 %v1255_v11  ;;  %v1253_v18 = vld [vmem:[%s2741_s15 + $0x20] sm:$0xff] }
 0x422   :  { %1179 = vmatpush1.msra.mxu0 %v1160_v20  ;;  %1803 = vmatprep.subr.mxu1 %v1270_v12 }
 0x423   :  { %1180 = vmatprep.subr.mxu0 %v1159_v21  ;;  %1804 = vmatpush3.msra.mxu1 %v1254_v13 }
 0x424   :  { %1181 = vmatpush1.msra.mxu0 %v1158_v23  ;;  %1805 = vmatprep.subr.mxu1 %v1269_v14 }
 0x425   :  { %1182 = vmatprep.subr.mxu0 %v1157_v19  ;;  %1806 = vmatpush3.msra.mxu1 %v1253_v18 }
 0x426   :  { %1183 = vmatpush1.msra.mxu0 %v1156_v24 }
 0x427   :  { %1184 = vmatprep.subr.mxu0 %v1155_v26 }
 0x428   :  { %1185 = vmatpush1.msra.mxu0 %v1154_v27  ;;  %v1268_v27 = vld [vmem:[%s2741_s15 + $0x98] sm:$0xff] }
 0x429   :  { %1186 = vmatprep.subr.mxu0 %v1153_v22  ;;  %1807 = vmatprep.subr.mxu1 %v1268_v27  ;;  %v1252_v22 = vld [vmem:[%s2741_s15 + $0x18] sm:$0xff] }
 0x42a   :  { %1187 = vmatpush1.msra.mxu0 %v1152_v29  ;;  %1808 = vmatpush3.msra.mxu1 %v1252_v22  ;;  %v1267_v29 = vld [vmem:[%s2741_s15 + $0x90] sm:$0xff] }
 0x42b   :  { %1188 = vmatprep.subr.mxu0 %v1151_v30  ;;  %1809 = vmatprep.subr.mxu1 %v1267_v29  ;;  %v1251_v30 = vld [vmem:[%s2741_s15 + $0x10] sm:$0xff] }
 0x42c   :  { %1189 = vmatpush1.msra.mxu0 %v1150_v32  ;;  %1810 = vmatpush3.msra.mxu1 %v1251_v30  ;;  %v1266_v32 = vld [vmem:[%s2741_s15 + $0x88] sm:$0xff] }
 0x42d   :  { %1190 = vmatprep.subr.mxu0 %v1149_v25  ;;  %1811 = vmatprep.subr.mxu1 %v1266_v32  ;;  %v1250_v25 = vld [vmem:[%s2741_s15 + $0x8] sm:$0xff] }
 0x42e   :  { %1191 = vmatpush1.msra.mxu0 %v1148_v33  ;;  %v1265_v33 = vld [vmem:[%s2741_s15 + $0x80] sm:$0xff]  ;;  %1812 = vmatpush3.msra.mxu1 %v1250_v25 }
 0x42f   :  { %1192 = vmatprep.subr.mxu0 %v1147_v35  ;;  %v1249_v35 = vld [vmem:[%s2741_s15] sm:$0xff]  ;;  %1813 = vmatprep.subr.mxu1 %v1265_v33 }
 0x430   :  { %1193 = vmatpush1.msra.mxu0 %v1146_v36  ;;  %v1359_v36 = vld [vmem:[%s2743_s17] sm:$0x3f]  ;;  %1814 = vmatpush3.msra.mxu1 %v1249_v35 }
 0x431   :  { %1194 = vmatprep.subr.mxu0 %v1145_v28  ;;  %v1358_v28 = vld [vmem:[%s2771_s6] sm:$0x3]  ;;  %1928 = vmatprep.subr.mxu1 %v1989_v2 }
 0x432   :  { %1195 = vmatpush1.msra.mxu0 %v1144_v38  ;;  %v1164_v38 = vld [vmem:[%s2740_s14] sm:$0x3] }
 0x433   :  { %1196 = vmatprep.subr.mxu0 %v1143_v39  ;;  %v1172_v39 = vsub.s32 1, %v2289_v15  ;;  %v1451_v15 = vld [vmem:[%s2745_s19 + $0x28] sm:$0xff] }
 0x434   :  { %1197 = vmatpush1.msra.mxu0 %v1142_v41  ;;  %v1169_v41 = vrot.slane %v1164_v38, %v2292_v16  ;;  %v1450_v16 = vld [vmem:[%s2745_s19 + $0x20] sm:$0xff] }
 0x435   :  { %1198 = vmatprep.subr.mxu0 %v1141_v31  ;;  %v1173_v31 = vrot.slane %v1164_v38, %v1172_v39 }
 0x436   :  { %1199 = vmatpush1.msra.mxu0 %v1140_v42 }
 0x437   :  { %1200 = vmatprep.subr.mxu0 %v1139_v43 }
 0x438   :  { %1201 = vmatpush1.msra.mxu0 %v1138_v44 }
 0x439   :  { %1202 = vmatprep.subr.mxu0 %v1137_v34 }
 0x43a   :  { %1203 = vmatpush1.msra.mxu0 %v1136_v45 }
 0x43b   :  { %1204 = vmatprep.subr.mxu0 %v1135_v46 }
 0x43c   :  { %1205 = vmatpush1.msra.mxu0 %v1134_v47  ;;  %v1453_v47 = vld [vmem:[%s2745_s19 + $0x38] sm:$0xff] }
 0x43d   :  { %1206 = vmatprep.subr.mxu0 %v1133_v37  ;;  %v1452_v37 = vld [vmem:[%s2745_s19 + $0x30] sm:$0xff] }
 0x43e   :  { %1207 = vmatpush1.msra.mxu0 %v1132_v49  ;;  %v1738_v49 = vld [vmem:[%s2744_s18] ss:$0 sm:$0xff] }
 0x43f   :  { %1918 = vmatprep.subr.mxu0 %v1989_v2 }
 0x4d3   :  { %v2527_v48 = vpop.f32.mrf.mxu0 }
 0x4d5   :  { %v1902_v52 = vpop.f32.mrf.mxu0 }
 0x4d7   :  { %v961_v56 = vpop.f32.mrf.mxu0 }
 0x4d8   :  { %1116 = vrot.lane.b32.xlu1 %v961_v56, %s1993_s29  ;;  %v1454_v56 = vld [vmem:[%s2746_s20] sm:$0xff] }
 0x4d9   :  { %v1907_v59 = vpop.f32.mrf.mxu0 }
 0x4da   :  { %v1737_v59 = vld [vmem:[%s2742_s16] ss:$0 sm:$0xff] }
 0x4db   :  { %v1036_v62 = vpop.f32.mrf.mxu0 }
 0x4dc   :  { %1120 = vrot.lane.b32.xlu1 %v1036_v62, %s1994_s9 }
 0x4dd   :  { %v1912_v6 = vpop.f32.mrf.mxu0 }
 0x4df   :  { %v1111_v3 = vpop.f32.mrf.mxu0 }
 0x4e0   :  { %1124 = vrot.lane.b32.xlu0 %v1111_v3, %s1992_s30  ;;  %v1610_v3 = vld [vmem:[%s2748_s22] sm:$0xff]  ;;  %s2772_s30 = sld [smem:[#allocation8_spill]] }
 0x4e1   :  { %v1917_v4 = vpop.f32.mrf.mxu0 }
 0x54a   :  { %v1117_v20 = vpop.permute.xlu1 %1116 }
 0x54b   :  { %v1128_v23 = vsel %vm1127_vm9, %v2527_v48, %v1117_v20  ;;  %v1449_v48 = vld [vmem:[%s2745_s19 + $0x18] sm:$0xff] }
 0x54e   :  { %v1121_v21 = vpop.permute.xlu1 %1120 }
 0x54f   :  { %v1130_v19 = vsel %vm1129_vm10, %v1128_v23, %v1121_v21 }
 0x552   :  { %v1125_v24 = vpop.permute.xlu0 %1124 }
 0x553   :  { %v1131_v26 = vsel %vm714_vm6, %v1130_v19, %v1125_v24 }
 0x554   :  { %1241 = vmatmul.mubr.f32.vlgmr.msra.gmra.mxu0 %v1131_v26 }
 0x555   :  { %1920 = vmatprep.mubr.msk.f32.mxu0 %vm1990_vm1, %v1989_v2  ;;  %1919 = vmatpush3.msk.msra.mxu0 %vm1371_vm11, %v1359_v36 }
 0x556   :  { %1923 = vmatprep.subr.mxu0 %v1989_v2 }
 0x558   :  { %1921 = vmatmul.mubr.msk.f32.vlgmr.msra.gmra.mxu0 %vm1367_vm12, %v1358_v28 }
 0x559   :  { %1925 = vmatprep.mubr.msk.f32.mxu0 %vm1990_vm1, %v1989_v2  ;;  %1924 = vmatpush3.msra.mxu0 %v1454_v56 }
 0x55a   :  { %1947 = vmatprep.subr.mxu0 %v1989_v2 }
 0x614   :  { %v1242_v42 = vpop.f32.mrf.mxu0 }
 0x615   :  { %v1243_v43 = vadd.f32 %v1242_v42, %v1169_v41 }
 0x616   :  { %v1244_v44 = vpop.f32.mrf.mxu0 }
 0x617   :  { %v1245_v34 = vadd.f32 %v1244_v44, %v1173_v31  ;;  %v1247_v46 = vmax.f32 %v1243_v43, 0.0 }
 0x618   :  { %v1441_v50 = vpop.f32.mrf.mxu0 }
 0x619   :  { %v1248_v45 = vmax.f32 %v1245_v34, 0.0  ;;  %v1442_v51 = vadd.f32 %v1738_v49, %v1441_v50 }
 0x61a   :  { %v1922_v52 = vpop.f32.mrf.mxu0 }
 0x61b   :  { %1352 = vmatprep.mubr.f32.mxu1 %v1248_v45  ;;  %v1445_v54 = vmax.f32 %v1442_v51, 0.0 }
 0x61c   :  { %1353 = vmatmul.mubr.f32.vlgmr.msra.gmra.mxu1 %v1247_v46 }
 0x61d   :  { %1929 = vmatpush3.msra.mxu1 %v1453_v47  ;;  %1944 = vmatprep.mubr.msk.f32.mxu1 %vm1990_vm1, %v1989_v2 }
 0x61e   :  { %1930 = vmatprep.subr.mxu1 %v1989_v2  ;;  %1926 = vmatmul.mubr.msk.f32.vlgmr.msra.gmra.mxu0 %vm816_vm8, %v1445_v54 }
 0x61f   :  { %1931 = vmatpush3.msra.mxu1 %v1452_v37  ;;  %1955 = vmatprep.mubr.msk.f32.mxu0 %vm1990_vm1, %v1989_v2 }
 0x620   :  { %1932 = vmatprep.subr.mxu1 %v1989_v2  ;;  %1948 = vmatpush3.msra.mxu0 %v1613_v0 }
 0x621   :  { %1933 = vmatpush3.msra.mxu1 %v1451_v15  ;;  %1949 = vmatprep.subr.mxu0 %v1989_v2 }
 0x622   :  { %1934 = vmatprep.subr.mxu1 %v1989_v2  ;;  %1950 = vmatpush3.msra.mxu0 %v1612_v7 }
 0x623   :  { %1935 = vmatpush3.msra.mxu1 %v1450_v16  ;;  %1951 = vmatprep.subr.mxu0 %v1989_v2 }
 0x624   :  { %1936 = vmatprep.subr.mxu1 %v1989_v2  ;;  %1952 = vmatpush3.msra.mxu0 %v1611_v1 }
 0x625   :  { %1937 = vmatpush3.msra.mxu1 %v1449_v48  ;;  %1953 = vmatprep.subr.mxu0 %v1989_v2 }
 0x626   :  { %1938 = vmatprep.subr.mxu1 %v1989_v2  ;;  %1954 = vmatpush3.msra.mxu0 %v1610_v3 }
 0x627   :  { %1939 = vmatpush3.msra.mxu1 %v1448_v40 }
 0x628   :  { %1940 = vmatprep.subr.mxu1 %v1989_v2 }
 0x629   :  { %1941 = vmatpush3.msra.mxu1 %v1447_v55 }
 0x62a   :  { %1942 = vmatprep.subr.mxu1 %v1989_v2  ;;  %v1694_v2 = vld [vmem:[%s2772_s30] sm:$0x3] }
 0x62b   :  { %1943 = vmatpush3.msra.mxu1 %v1446_v57 }
 0x6dc   :  { %v1815_v58 = vpop.f32.mrf.mxu1 }
 0x6de   :  { %v1816_v60 = vpop.f32.mrf.mxu1  ;;  %v1524_v63 = vpop.f32.mrf.mxu0 }
 0x6df   :  { %v1817_v61 = vadd.f32 %v1816_v60, %v1815_v58 }
 0x6e0   :  { %v1927_v6 = vpop.f32.mrf.mxu0 }
 0x6e1   :  { %v1355_v62 = vadd.f32 %v1817_v61, %v1737_v59 }
 0x6e3   :  { %1945 = vmatmul.mubr.msk.f32.vlgmr.msra.gmra.mxu1 %vm1129_vm10, %v1355_v62 }
 0x7a3   :  { %v1597_v53 = vpop.f32.mrf.mxu1 }
 0x7a4   :  { %v1598_v4 = vadd.f32 %v1597_v53, %v1524_v63 }
 0x7a5   :  { %v1946_v5 = vpop.f32.mrf.mxu1 }
 0x7a6   :  { %v1608_v8 = vadd.f32 %v1743_v17, %v1598_v4 }
 0x7a8   :  { %v1609_v9 = vmax.f32 %v1608_v8, 0.0 }
 0x7aa   :  { %1956 = vmatmul.mubr.msk.f32.vlgmr.msra.gmra.mxu0 %vm1127_vm9, %v1609_v9 }
 0x86a   :  { %v1690_v11 = vpop.f32.mrf.mxu0 }
 0x86b   :  { %v1691_v12 = vadd.f32 %v1744_v10, %v1690_v11 }
 0x86c   :  { %v1957_v13 = vpop.f32.mrf.mxu0 }
 0x86d   :  { %v1695_v14 = vmul.f32 %v1694_v2, %v1691_v12 }
 0x86f   :  { %1697 = vst.msk [vmem:[#allocation2] sm:$0x3] %vm1696_vm13, %v1695_v14 }
 0x870   :  { %1978 = shalt.err (!%p1975_p4)
}
 0x871   :  { %1707 = dma.vmem_to_hbm [thread:$0]  %s1705_s4, 32, %s2750_s24, [#allocation3]  }
 0x872   :  { %1987 = dma.done.wait [#allocation3], 32  }
 0x873   :  { %1988 = vsyncadd [#allocation3], 4294967264 }
 0x874   :  { %1711 = vsyncpa [#allocation3], 1 }

</bundles_post_ra>
